<compile_context>
chip_gen: v5e
topology: v5e:2x2
jax: 0.10.0
libtpu: 0.0.40
codegen_flags: <defaults>
</compile_context>

<pallas_src>
import functools

import jax
import jax.numpy as jnp
from jax.experimental import pallas as pl
from jax.experimental.pallas import tpu as pltpu

BN_EPS = 1e-5  # PyTorch BatchNorm1d default eps


# --------------------------------------------------------------------------
# Kernel
# --------------------------------------------------------------------------
def t3net_kernel(n_layers, x_ref, ab_ref, *rest):
    """One N-tile of the T3Net forward, transposed (H, TILE_N) layout.

    Refs:
      x_ref  : VMEM (1, TN)  f32   input x values (lane axis = batch)
      ab_ref : VMEM (1, 2)   f32   [alpha, beta] (already exp+clamped)
      rest   : folded params (see fold_params ordering) + out_ref (1, TN)
    """
    *p, out_ref = rest

    x = x_ref[...]            # (1, TN)
    ab = ab_ref[...]          # (1, 2)

    # ---- first block: Linear(1,H) -> Tanh -> BN(folded affine) ----
    w1, b1, s1, t1 = p[0][...], p[1][...], p[2][...], p[3][...]   # (H,1) each
    h = s1 * jnp.tanh(w1 * x + b1) + t1                            # (H, TN)

    # ---- hidden blocks: (Linear∘BN folded) -> Tanh -> Dropout(identity) ----
    off = 4
    for _ in range(n_layers - 1):
        w, b = p[off][...], p[off + 1][...]                        # (H,H), (H,1)
        h = jnp.tanh(jnp.dot(w, h, preferred_element_type=jnp.float32) + b)
        off += 2

    # ---- final: Linear(H, 1) as a sublane reduction ----
    wf, bf = p[off][...], p[off + 1][...]                          # (H,1), (1,1)
    raw = jnp.sum(h * wf, axis=0, keepdims=True) + bf              # (1, TN)

    # softplus (numerically stable)
    pos = jnp.maximum(raw, 0.0) + jnp.log1p(jnp.exp(-jnp.abs(raw)))

    # preprocessing x^alpha * (1-x)^beta on the lane-dense row
    x_ = jnp.clip(x, 1e-6, 1.0 - 1e-6)
    pre = jnp.exp(ab[:, 0:1] * jnp.log(x_) + ab[:, 1:2] * jnp.log1p(-x_))

    out_ref[...] = pre * pos                                       # (1, TN)


# --------------------------------------------------------------------------
# Host-side parameter handling
# --------------------------------------------------------------------------
def init_params(key, n_hidden, n_layers, init_alpha=1.0, init_beta=3.0):
    """PyTorch-layout raw parameters (W:(out,in), b:(out,), BN vectors)."""
    log_ab = jnp.log(jnp.array([init_alpha, init_beta], dtype=jnp.float32))

    def linear(k, fan_in, fan_out):
        k1, k2 = jax.random.split(k)
        bound = 1.0 / (fan_in ** 0.5)
        w = jax.random.uniform(k1, (fan_out, fan_in), jnp.float32, -bound, bound)
        b = jax.random.uniform(k2, (fan_out,), jnp.float32, -bound, bound)
        return w, b

    def bn(k, h):
        kg, kb, km, kv = jax.random.split(k, 4)
        # Non-trivial running stats so BN folding is actually exercised.
        g = jax.random.uniform(kg, (h,), jnp.float32, 0.5, 1.5)
        bt = jax.random.uniform(kb, (h,), jnp.float32, -0.5, 0.5)
        m = jax.random.uniform(km, (h,), jnp.float32, -0.5, 0.5)
        v = jax.random.uniform(kv, (h,), jnp.float32, 0.5, 1.5)
        return g, bt, m, v

    keys = jax.random.split(key, 2 * n_layers + 1)
    raw = []
    w, b = linear(keys[0], 1, n_hidden)
    raw += [w, b, *bn(keys[1], n_hidden)]
    for i in range(1, n_layers):
        w, b = linear(keys[2 * i], n_hidden, n_hidden)
        raw += [w, b, *bn(keys[2 * i + 1], n_hidden)]
    wf, bf = linear(keys[2 * n_layers], n_hidden, 1)
    raw += [wf, bf]
    return log_ab, raw


def fold_params(raw, n_layers):
    """Fold inference BatchNorm into affine/Linear params; kernel layout."""
    w1, b1, g1, bt1, m1, v1 = raw[0:6]
    s1 = g1 / jnp.sqrt(v1 + BN_EPS)
    t1 = bt1 - m1 * s1
    k = [
        w1,                      # (H, 1)
        b1.reshape(-1, 1),       # (H, 1)
        s1.reshape(-1, 1),       # (H, 1)  BN-after-tanh scale
        t1.reshape(-1, 1),       # (H, 1)  BN-after-tanh shift
    ]
    off = 6
    for _ in range(n_layers - 1):
        w, b, g, bt, m, v = raw[off:off + 6]
        s = g / jnp.sqrt(v + BN_EPS)
        k.append(w * s[:, None])                      # (H, H)  W' = diag(s) @ W
        k.append((s * (b - m) + bt).reshape(-1, 1))   # (H, 1)  b'
        off += 6
    wf, bf = raw[off], raw[off + 1]
    k.append(wf.T)               # (H, 1) final weight column
    k.append(bf.reshape(1, 1))   # (1, 1)
    return k


# --------------------------------------------------------------------------
# Wrapper
# --------------------------------------------------------------------------
def t3net_forward(x, log_ab, kparams, n_layers, tile_n=256):
    x_flat = x.reshape(-1).astype(jnp.float32)
    n = x_flat.shape[0]
    n_tiles = pl.cdiv(n, tile_n)
    n_pad = n_tiles * tile_n

    # Lane-dense (1, N_pad) input row; pad with a benign in-range value.
    x_row = jnp.full((1, n_pad), 0.5, jnp.float32).at[0, :n].set(x_flat)

    alpha = jnp.maximum(jnp.exp(log_ab[0]), 0.001)
    beta = jnp.maximum(jnp.exp(log_ab[1]), 0.001)
    ab = jnp.stack([alpha, beta]).reshape(1, 2)

    n_hidden = kparams[0].shape[0]
    param_bytes = sum(int(p.size) * 4 for p in kparams) + 8
    cost = pl.CostEstimate(
        flops=int(2 * n_pad * n_hidden * n_hidden * (n_layers - 1)
                  + 6 * n_pad * n_hidden + 16 * n_pad),
        transcendentals=int(n_pad * (n_hidden * n_layers + 6)),
        bytes_accessed=int(8 * n_pad + param_bytes),
    )

    in_specs = [
        pl.BlockSpec((1, tile_n), lambda i: (0, i)),   # x: tiled along lanes
        pl.BlockSpec((1, 2), lambda i: (0, 0)),        # alpha/beta row
    ]
    # Folded params: constant index_map -> fetched once, VMEM-resident.
    in_specs += [pl.BlockSpec(p.shape, lambda i: (0, 0)) for p in kparams]

    out = pl.pallas_call(
        functools.partial(t3net_kernel, n_layers),
        out_shape=jax.ShapeDtypeStruct((1, n_pad), jnp.float32),
        grid=(n_tiles,),
        in_specs=in_specs,
        out_specs=pl.BlockSpec((1, tile_n), lambda i: (0, i)),
        compiler_params=pltpu.CompilerParams(
            dimension_semantics=("parallel",),
        ),
        cost_estimate=cost,
    )(x_row, ab, *kparams)

    return out[0, :n]  # (N,)


# --------------------------------------------------------------------------
# Pure-JAX reference (un-folded, PyTorch-style math)
# --------------------------------------------------------------------------
def ref_forward(x, log_ab, raw, n_layers):
    alpha = jnp.maximum(jnp.exp(log_ab[0]), 0.001)
    beta = jnp.maximum(jnp.exp(log_ab[1]), 0.001)

    w1, b1, g1, bt1, m1, v1 = raw[0:6]
    h = jnp.tanh(x @ w1.T + b1)
    h = g1 * (h - m1) / jnp.sqrt(v1 + BN_EPS) + bt1

    off = 6
    for _ in range(n_layers - 1):
        w, b, g, bt, m, v = raw[off:off + 6]
        h = h @ w.T + b
        h = g * (h - m) / jnp.sqrt(v + BN_EPS) + bt
        h = jnp.tanh(h)
        off += 6

    wf, bf = raw[off], raw[off + 1]
    raw_out = h @ wf.T + bf                     # (N, 1)
    pos = jax.nn.softplus(raw_out[:, 0])
    x_ = jnp.clip(x[:, 0], 1e-6, 1.0 - 1e-6)
    pre = x_ ** alpha * (1.0 - x_) ** beta
    return pre * pos


if __name__ == "__main__":
    N_GRID = 16
    N_HIDDEN = 32
    N_LAYERS = 3

    key = jax.random.PRNGKey(0)
    kx, kp = jax.random.split(key)

    # x in (0, 1), shape (N_grid, 1) — same as the PyTorch module's input.
    x = jax.random.uniform(kx, (N_GRID, 1), jnp.float32, 1e-4, 1.0 - 1e-4)

    log_ab, raw_params = init_params(kp, N_HIDDEN, N_LAYERS)
    kernel_params = fold_params(raw_params, N_LAYERS)

    out = t3net_forward(x, log_ab, kernel_params, N_LAYERS)
    out = jax.block_until_ready(out)

    ref = ref_forward(x, log_ab, raw_params, N_LAYERS)
    assert out.shape == (N_GRID,)
    assert jnp.allclose(out, ref, rtol=2e-4, atol=1e-6), (out, ref)

    print("KERNEL_OK")
</pallas_src>

<mosaic_0001>
module attributes {stable_mosaic.version = 11 : i64} {
  func.func @t3net_kernel(%arg0: i32, %arg1: memref<1x256xf32, #tpu.memory_space<vmem>>, %arg2: memref<1x2xf32, #tpu.memory_space<vmem>>, %arg3: memref<32x1xf32, #tpu.memory_space<vmem>>, %arg4: memref<32x1xf32, #tpu.memory_space<vmem>>, %arg5: memref<32x1xf32, #tpu.memory_space<vmem>>, %arg6: memref<32x1xf32, #tpu.memory_space<vmem>>, %arg7: memref<32x32xf32, #tpu.memory_space<vmem>>, %arg8: memref<32x1xf32, #tpu.memory_space<vmem>>, %arg9: memref<32x32xf32, #tpu.memory_space<vmem>>, %arg10: memref<32x1xf32, #tpu.memory_space<vmem>>, %arg11: memref<32x1xf32, #tpu.memory_space<vmem>>, %arg12: memref<1x1xf32, #tpu.memory_space<vmem>>, %arg13: memref<1x256xf32, #tpu.memory_space<vmem>>) attributes {dimension_semantics = [#tpu.dimension_semantics<parallel>], iteration_bounds = array<i64: 1>, scalar_prefetch = 0 : i64, scratch_operands = 0 : i64, tpu.core_type = #tpu.core_type<tc>, window_params = [{transform_indices = @transform_0, window_bounds = array<i64: 1, 256>}, {pipeline_mode = #tpu.pipeline_mode<synchronous>, transform_indices = @transform_1, window_bounds = array<i64: 1, 2>}, {pipeline_mode = #tpu.pipeline_mode<synchronous>, transform_indices = @transform_2, window_bounds = array<i64: 32, 1>}, {pipeline_mode = #tpu.pipeline_mode<synchronous>, transform_indices = @transform_3, window_bounds = array<i64: 32, 1>}, {pipeline_mode = #tpu.pipeline_mode<synchronous>, transform_indices = @transform_4, window_bounds = array<i64: 32, 1>}, {pipeline_mode = #tpu.pipeline_mode<synchronous>, transform_indices = @transform_5, window_bounds = array<i64: 32, 1>}, {pipeline_mode = #tpu.pipeline_mode<synchronous>, transform_indices = @transform_6, window_bounds = array<i64: 32, 32>}, {pipeline_mode = #tpu.pipeline_mode<synchronous>, transform_indices = @transform_7, window_bounds = array<i64: 32, 1>}, {pipeline_mode = #tpu.pipeline_mode<synchronous>, transform_indices = @transform_8, window_bounds = array<i64: 32, 32>}, {pipeline_mode = #tpu.pipeline_mode<synchronous>, transform_indices = @transform_9, window_bounds = array<i64: 32, 1>}, {pipeline_mode = #tpu.pipeline_mode<synchronous>, transform_indices = @transform_10, window_bounds = array<i64: 32, 1>}, {pipeline_mode = #tpu.pipeline_mode<synchronous>, transform_indices = @transform_11, window_bounds = array<i64: 1, 1>}, {transform_indices = @transform_12, window_bounds = array<i64: 1, 256>}]} {
    %c0 = arith.constant 0 : index
    %c0_0 = arith.constant 0 : index
    %0 = vector.load %arg1[%c0, %c0_0] : memref<1x256xf32, #tpu.memory_space<vmem>>, vector<1x256xf32>
    %c0_1 = arith.constant 0 : index
    %c0_2 = arith.constant 0 : index
    %1 = vector.load %arg2[%c0_1, %c0_2] : memref<1x2xf32, #tpu.memory_space<vmem>>, vector<1x2xf32>
    %c0_3 = arith.constant 0 : index
    %c0_4 = arith.constant 0 : index
    %2 = vector.load %arg3[%c0_3, %c0_4] : memref<32x1xf32, #tpu.memory_space<vmem>>, vector<32x1xf32>
    %c0_5 = arith.constant 0 : index
    %c0_6 = arith.constant 0 : index
    %3 = vector.load %arg4[%c0_5, %c0_6] : memref<32x1xf32, #tpu.memory_space<vmem>>, vector<32x1xf32>
    %c0_7 = arith.constant 0 : index
    %c0_8 = arith.constant 0 : index
    %4 = vector.load %arg5[%c0_7, %c0_8] : memref<32x1xf32, #tpu.memory_space<vmem>>, vector<32x1xf32>
    %c0_9 = arith.constant 0 : index
    %c0_10 = arith.constant 0 : index
    %5 = vector.load %arg6[%c0_9, %c0_10] : memref<32x1xf32, #tpu.memory_space<vmem>>, vector<32x1xf32>
    %6 = vector.broadcast %2 : vector<32x1xf32> to vector<32x256xf32>
    %7 = vector.broadcast %0 : vector<1x256xf32> to vector<32x256xf32>
    %8 = arith.mulf %6, %7 : vector<32x256xf32>
    %9 = vector.broadcast %3 : vector<32x1xf32> to vector<32x256xf32>
    %10 = arith.addf %8, %9 : vector<32x256xf32>
    %11 = math.tanh %10 : vector<32x256xf32>
    %12 = vector.broadcast %4 : vector<32x1xf32> to vector<32x256xf32>
    %13 = arith.mulf %12, %11 : vector<32x256xf32>
    %14 = vector.broadcast %5 : vector<32x1xf32> to vector<32x256xf32>
    %15 = arith.addf %13, %14 : vector<32x256xf32>
    %c0_11 = arith.constant 0 : index
    %c0_12 = arith.constant 0 : index
    %16 = vector.load %arg7[%c0_11, %c0_12] : memref<32x32xf32, #tpu.memory_space<vmem>>, vector<32x32xf32>
    %c0_13 = arith.constant 0 : index
    %c0_14 = arith.constant 0 : index
    %17 = vector.load %arg8[%c0_13, %c0_14] : memref<32x1xf32, #tpu.memory_space<vmem>>, vector<32x1xf32>
    %cst = arith.constant dense<0.000000e+00> : vector<32x256xf32>
    %18 = tpu.matmul %16, %15, %cst {dimension_numbers = #tpu.dot_dimension_numbers<[1], [0], [0], [1], [0, 0, 1, 1], [], []>} : vector<32x32xf32>, vector<32x256xf32>, vector<32x256xf32> -> vector<32x256xf32>
    %19 = vector.broadcast %17 : vector<32x1xf32> to vector<32x256xf32>
    %20 = arith.addf %18, %19 : vector<32x256xf32>
    %21 = math.tanh %20 : vector<32x256xf32>
    %c0_15 = arith.constant 0 : index
    %c0_16 = arith.constant 0 : index
    %22 = vector.load %arg9[%c0_15, %c0_16] : memref<32x32xf32, #tpu.memory_space<vmem>>, vector<32x32xf32>
    %c0_17 = arith.constant 0 : index
    %c0_18 = arith.constant 0 : index
    %23 = vector.load %arg10[%c0_17, %c0_18] : memref<32x1xf32, #tpu.memory_space<vmem>>, vector<32x1xf32>
    %cst_19 = arith.constant dense<0.000000e+00> : vector<32x256xf32>
    %24 = tpu.matmul %22, %21, %cst_19 {dimension_numbers = #tpu.dot_dimension_numbers<[1], [0], [0], [1], [0, 0, 1, 1], [], []>} : vector<32x32xf32>, vector<32x256xf32>, vector<32x256xf32> -> vector<32x256xf32>
    %25 = vector.broadcast %23 : vector<32x1xf32> to vector<32x256xf32>
    %26 = arith.addf %24, %25 : vector<32x256xf32>
    %27 = math.tanh %26 : vector<32x256xf32>
    %c0_20 = arith.constant 0 : index
    %c0_21 = arith.constant 0 : index
    %28 = vector.load %arg11[%c0_20, %c0_21] : memref<32x1xf32, #tpu.memory_space<vmem>>, vector<32x1xf32>
    %c0_22 = arith.constant 0 : index
    %c0_23 = arith.constant 0 : index
    %29 = vector.load %arg12[%c0_22, %c0_23] : memref<1x1xf32, #tpu.memory_space<vmem>>, vector<1x1xf32>
    %30 = vector.broadcast %28 : vector<32x1xf32> to vector<32x256xf32>
    %31 = arith.mulf %27, %30 : vector<32x256xf32>
    %cst_24 = arith.constant dense<0.000000e+00> : vector<256xf32>
    %32 = vector.multi_reduction <add>, %31, %cst_24 [0] : vector<32x256xf32> to vector<256xf32>
    %33 = vector.shape_cast %32 : vector<256xf32> to vector<1x256xf32>
    %34 = vector.broadcast %29 : vector<1x1xf32> to vector<1x256xf32>
    %35 = arith.addf %33, %34 : vector<1x256xf32>
    %cst_25 = arith.constant 0.000000e+00 : f32
    %36 = vector.broadcast %cst_25 : f32 to vector<1x256xf32>
    %37 = arith.maximumf %35, %36 : vector<1x256xf32>
    %38 = math.absf %35 : vector<1x256xf32>
    %cst_26 = arith.constant 0.000000e+00 : f32
    %39 = vector.broadcast %cst_26 : f32 to vector<1x256xf32>
    %40 = arith.subf %39, %38 : vector<1x256xf32>
    %41 = math.exp %40 : vector<1x256xf32>
    %42 = math.log1p %41 : vector<1x256xf32>
    %43 = arith.addf %37, %42 : vector<1x256xf32>
    %cst_27 = arith.constant 9.99999997E-7 : f32
    %cst_28 = arith.constant 0.999998986 : f32
    %44 = vector.broadcast %cst_27 : f32 to vector<1x256xf32>
    %45 = arith.maximumf %44, %0 : vector<1x256xf32>
    %46 = vector.broadcast %cst_28 : f32 to vector<1x256xf32>
    %47 = arith.minimumf %46, %45 : vector<1x256xf32>
    %48 = vector.extract_strided_slice %1 {offsets = [0, 0], sizes = [1, 1], strides = [1, 1]} : vector<1x2xf32> to vector<1x1xf32>
    %49 = math.log %47 : vector<1x256xf32>
    %50 = vector.broadcast %48 : vector<1x1xf32> to vector<1x256xf32>
    %51 = arith.mulf %50, %49 : vector<1x256xf32>
    %52 = vector.extract_strided_slice %1 {offsets = [0, 1], sizes = [1, 1], strides = [1, 1]} : vector<1x2xf32> to vector<1x1xf32>
    %cst_29 = arith.constant 0.000000e+00 : f32
    %53 = vector.broadcast %cst_29 : f32 to vector<1x256xf32>
    %54 = arith.subf %53, %47 : vector<1x256xf32>
    %55 = math.log1p %54 : vector<1x256xf32>
    %56 = vector.broadcast %52 : vector<1x1xf32> to vector<1x256xf32>
    %57 = arith.mulf %56, %55 : vector<1x256xf32>
    %58 = arith.addf %51, %57 : vector<1x256xf32>
    %59 = math.exp %58 : vector<1x256xf32>
    %60 = arith.mulf %59, %43 : vector<1x256xf32>
    %c0_30 = arith.constant 0 : index
    %c0_31 = arith.constant 0 : index
    %61 = vector.load %arg13[%c0_30, %c0_31] : memref<1x256xf32, #tpu.memory_space<vmem>>, vector<1x256xf32>
    tpu.vector_store %arg13[%c0_30, %c0_31], %60 {strides = array<i32>} : memref<1x256xf32, #tpu.memory_space<vmem>>, vector<1x256xf32>,
    return
  }
  func.func @transform_0(%arg0: i32) -> (i32, i32) {
    %c0_i32 = arith.constant 0 : i32
    %c0_i32_0 = arith.constant 0 : i32
    return %c0_i32, %arg0 : i32, i32
  }
  func.func @transform_1(%arg0: i32) -> (i32, i32) {
    %c0_i32 = arith.constant 0 : i32
    %c0_i32_0 = arith.constant 0 : i32
    %c0_i32_1 = arith.constant 0 : i32
    return %c0_i32, %c0_i32_0 : i32, i32
  }
  func.func @transform_2(%arg0: i32) -> (i32, i32) {
    %c0_i32 = arith.constant 0 : i32
    %c0_i32_0 = arith.constant 0 : i32
    %c0_i32_1 = arith.constant 0 : i32
    return %c0_i32, %c0_i32_0 : i32, i32
  }
  func.func @transform_3(%arg0: i32) -> (i32, i32) {
    %c0_i32 = arith.constant 0 : i32
    %c0_i32_0 = arith.constant 0 : i32
    %c0_i32_1 = arith.constant 0 : i32
    return %c0_i32, %c0_i32_0 : i32, i32
  }
  func.func @transform_4(%arg0: i32) -> (i32, i32) {
    %c0_i32 = arith.constant 0 : i32
    %c0_i32_0 = arith.constant 0 : i32
    %c0_i32_1 = arith.constant 0 : i32
    return %c0_i32, %c0_i32_0 : i32, i32
  }
  func.func @transform_5(%arg0: i32) -> (i32, i32) {
    %c0_i32 = arith.constant 0 : i32
    %c0_i32_0 = arith.constant 0 : i32
    %c0_i32_1 = arith.constant 0 : i32
    return %c0_i32, %c0_i32_0 : i32, i32
  }
  func.func @transform_6(%arg0: i32) -> (i32, i32) {
    %c0_i32 = arith.constant 0 : i32
    %c0_i32_0 = arith.constant 0 : i32
    %c0_i32_1 = arith.constant 0 : i32
    return %c0_i32, %c0_i32_0 : i32, i32
  }
  func.func @transform_7(%arg0: i32) -> (i32, i32) {
    %c0_i32 = arith.constant 0 : i32
    %c0_i32_0 = arith.constant 0 : i32
    %c0_i32_1 = arith.constant 0 : i32
    return %c0_i32, %c0_i32_0 : i32, i32
  }
  func.func @transform_8(%arg0: i32) -> (i32, i32) {
    %c0_i32 = arith.constant 0 : i32
    %c0_i32_0 = arith.constant 0 : i32
    %c0_i32_1 = arith.constant 0 : i32
    return %c0_i32, %c0_i32_0 : i32, i32
  }
  func.func @transform_9(%arg0: i32) -> (i32, i32) {
    %c0_i32 = arith.constant 0 : i32
    %c0_i32_0 = arith.constant 0 : i32
    %c0_i32_1 = arith.constant 0 : i32
    return %c0_i32, %c0_i32_0 : i32, i32
  }
  func.func @transform_10(%arg0: i32) -> (i32, i32) {
    %c0_i32 = arith.constant 0 : i32
    %c0_i32_0 = arith.constant 0 : i32
    %c0_i32_1 = arith.constant 0 : i32
    return %c0_i32, %c0_i32_0 : i32, i32
  }
  func.func @transform_11(%arg0: i32) -> (i32, i32) {
    %c0_i32 = arith.constant 0 : i32
    %c0_i32_0 = arith.constant 0 : i32
    %c0_i32_1 = arith.constant 0 : i32
    return %c0_i32, %c0_i32_0 : i32, i32
  }
  func.func @transform_12(%arg0: i32) -> (i32, i32) {
    %c0_i32 = arith.constant 0 : i32
    %c0_i32_0 = arith.constant 0 : i32
    return %c0_i32, %arg0 : i32, i32
  }
}

</mosaic_0001>

<bundles_post_ra>
// kernel: tpu_custom_call.1
= control target key start
LH: loop header
LB: loop body
LE: loop exit
PB: predicated region body
PF: predicated region fallthrough
CT: control target
= control target key end

     0   :  { %s867_s0 = inlined_call_operand.vmem [shape: f32[1,256], index: 0, kind: input, shape index: {}]   ;;  %s868_s1 = inlined_call_operand.vmem [shape: f32[1,2], index: 1, kind: input, shape index: {}]   ;;  %s869_s2 = inlined_call_operand.vmem [shape: f32[32,1], index: 2, kind: input, shape index: {}]   ;;  %s870_s3 = inlined_call_operand.vmem [shape: f32[32,1], index: 3, kind: input, shape index: {}]   ;;  %s871_s4 = inlined_call_operand.vmem [shape: f32[32,1], index: 4, kind: input, shape index: {}]   ;;  %s872_s5 = inlined_call_operand.vmem [shape: f32[32,1], index: 5, kind: input, shape index: {}]   ;;  %s873_s6 = inlined_call_operand.vmem [shape: f32[32,32], index: 6, kind: input, shape index: {}]   ;;  %s874_s7 = inlined_call_operand.vmem [shape: f32[32,1], index: 7, kind: input, shape index: {}]   ;;  %s875_s8 = inlined_call_operand.vmem [shape: f32[32,32], index: 8, kind: input, shape index: {}]   ;;  %s876_s9 = inlined_call_operand.vmem [shape: f32[32,1], index: 9, kind: input, shape index: {}]   ;;  %s877_s10 = inlined_call_operand.vmem [shape: f32[32,1], index: 10, kind: input, shape index: {}]   ;;  %s878_s11 = inlined_call_operand.<no memory space> [shape: f32[1,1], index: 11, kind: input, shape index: {}]   ;;  %s879_s12 = inlined_call_operand.hbm [shape: f32[1,256], index: 12, kind: output, shape index: {}]  }
   0x1   :  { %v17_v0 = vstv %s878_s11 }
   0x2   :  { %18 = vst [vmem:[#allocation2] sm:$0x1] %v17_v0 }
   0x3   :  { %v53_v1 = vld [vmem:[%s870_s3 + $0x18] sm:$0xff]  ;;  %v52_v2 = vld [vmem:[%s870_s3 + $0x10] sm:$0xff]  ;;  %v658_v4 = vmov 0  }
   0x4   :  { %v49_v3 = vld [vmem:[%s869_s2 + $0x18] sm:$0xff]  ;;  %568 = vset.pattern.permute.xlu2 %v658_v4  ;;  %567 = vset.pattern.permute.xlu1 %v658_v4 }
   0x5   :  { %566 = vset.pattern.permute.xlu0 %v658_v4  ;;  %112 = vperm.xlu1 %567, %v53_v1  }
   0x6   :  { %107 = vperm.xlu2 %568, %v52_v2   ;;  %79 = vperm.xlu0 %566, %v49_v3  }
   0x7   :  { %19 = vsyncpa [#allocation4], 0  ;;  %v47_v5 = vld [vmem:[%s869_s2 + $0x8] sm:$0xff]  ;;  %v48_v6 = vld [vmem:[%s869_s2 + $0x10] sm:$0xff]  ;;  %v659_v32 = vmov 1   ;;  %vm215_vm0 = vcmask 261120  }
   0x8   :  { %v46_v7 = vld [vmem:[%s869_s2] sm:$0xff]  ;;  %v51_v9 = vld [vmem:[%s870_s3 + $0x8] sm:$0xff]  ;;  %v57_v10 = vld [vmem:[%s871_s4 + $0x18] sm:$0xff]  ;;  %vm522_vm4 = vcmask 1040384   ;;  %s538_s28 = sshll.u32 %s879_s12, 4  ;;  %s539_s28 = int_to_ptr.hbm [resolvable:$true] %s538_s28 }
   0x9   :  { %v50_v8 = vld [vmem:[%s870_s3] sm:$0xff]  ;;  %v61_v11 = vld [vmem:[%s872_s5 + $0x18] sm:$0xff]  ;;  %v56_v12 = vld [vmem:[%s871_s4 + $0x10] sm:$0xff] }
   0xa   :  { %v55_v13 = vld [vmem:[%s871_s4 + $0x8] sm:$0xff]  ;;  %v54_v14 = vld [vmem:[%s871_s4] sm:$0xff]  ;;  %v60_v15 = vld [vmem:[%s872_s5 + $0x10] sm:$0xff] }
   0xb   :  { %v59_v16 = vld [vmem:[%s872_s5 + $0x8] sm:$0xff]  ;;  %v194_v17 = vld [vmem:[%s874_s7 + $0x18] sm:$0xff]  ;;  %v58_v18 = vld [vmem:[%s872_s5] sm:$0xff] }
   0xc   :  { %v193_v19 = vld [vmem:[%s874_s7 + $0x10] sm:$0xff]  ;;  %v191_v20 = vld [vmem:[%s874_s7] sm:$0xff]  ;;  %v192_v21 = vld [vmem:[%s874_s7 + $0x8] sm:$0xff] }
   0xd   :  { %69 = vperm.xlu1 %567, %v47_v5   ;;  %v298_v22 = vld [vmem:[%s876_s9] sm:$0xff]  ;;  %v300_v23 = vld [vmem:[%s876_s9 + $0x10] sm:$0xff]  ;;  %v299_v24 = vld [vmem:[%s876_s9 + $0x8] sm:$0xff] }
   0xe   :  { %74 = vperm.xlu0 %566, %v48_v6   ;;  %64 = vperm.xlu2 %568, %v46_v7   ;;  %v301_v25 = vld [vmem:[%s876_s9 + $0x18] sm:$0xff]  ;;  %v401_v26 = vld [vmem:[%s877_s10 + $0x8] sm:$0xff]  ;;  %v400_v27 = vld [vmem:[%s877_s10] sm:$0xff] }
   0xf   :  { %v402_v28 = vld [vmem:[%s877_s10 + $0x10] sm:$0xff]  ;;  %v404_v29 = vld [vmem:[#allocation2] sm:$0x1]  ;;  %v403_v30 = vld [vmem:[%s877_s10 + $0x18] sm:$0xff] }
  0x10   :  { %v45_v31 = vld [vmem:[%s868_s1] sm:$0x1] }
  0x11   :  { %v819_v34 = vld [vmem:[%s867_s0] sm:$0x3] }
  0x12   :  { %v83_v36 = vperm.slane %v819_v34, 0  ;;  %v84_v38 = vperm.slane %v819_v34, 1 }
  0x15   :  { %97 = vperm.xlu1 %567, %v50_v8  }
  0x16   :  { %102 = vperm.xlu0 %566, %v51_v9   ;;  %148 = vperm.xlu2 %568, %v57_v10  }
  0x1d   :  { %176 = vperm.xlu1 %567, %v61_v11  }
  0x1e   :  { %143 = vperm.xlu0 %566, %v56_v12   ;;  %138 = vperm.xlu2 %568, %v55_v13  }
  0x25   :  { %133 = vperm.xlu1 %567, %v54_v14  }
  0x26   :  { %171 = vperm.xlu0 %566, %v60_v15   ;;  %166 = vperm.xlu2 %568, %v59_v16  }
  0x2d   :  { %212 = vperm.xlu1 %567, %v194_v17  }
  0x2e   :  { %161 = vperm.xlu0 %566, %v58_v18   ;;  %207 = vperm.xlu2 %568, %v193_v19  }
  0x35   :  { %197 = vperm.xlu1 %567, %v191_v20  }
  0x36   :  { %202 = vperm.xlu0 %566, %v192_v21   ;;  %304 = vperm.xlu2 %568, %v298_v22  }
  0x3d   :  { %314 = vperm.xlu1 %567, %v300_v23  }
  0x3e   :  { %309 = vperm.xlu0 %566, %v299_v24   ;;  %319 = vperm.xlu2 %568, %v301_v25  }
  0x45   :  { %412 = vperm.xlu1 %567, %v401_v26  }
  0x46   :  { %407 = vperm.xlu0 %566, %v400_v27   ;;  %417 = vperm.xlu2 %568, %v402_v28   ;;  %v187_v28 = vld [vmem:[%s873_s6] sm:$0xff] }
  0x4d   :  { %453 = vperm.xlu1 %567, %v404_v29   ;;  %v188_v29 = vld [vmem:[%s873_s6 + $0x8] sm:$0xff] }
  0x4e   :  { %422 = vperm.xlu0 %566, %v403_v30   ;;  %495 = vperm.xlu2 %568, %v45_v31   ;;  %v189_v30 = vld [vmem:[%s873_s6 + $0x10] sm:$0xff] }
  0x56   :  { %569 = vset.pattern.permute.xlu0 %v659_v32 }
  0x57   :  { %511 = vperm.xlu0 %569, %v45_v31   ;;  %v190_v31 = vld [vmem:[%s873_s6 + $0x18] sm:$0xff] }
  0x60   :  { %v108_v33 = vpop.permute.xlu2 %107 }
  0x68   :  { %v65_v39 = vpop.permute.xlu2 %64 }
  0x69   :  { %v87_v62 = vmul.f32 %v83_v36, %v65_v39  ;;  %v88_v3 = vmul.f32 %v84_v38, %v65_v39 }
  0x70   :  { %v149_v46 = vpop.permute.xlu2 %148 }
  0x77   :  { %v113_v35 = vpop.permute.xlu1 %112 }
  0x78   :  { %v80_v37 = vpop.permute.xlu0 %79  ;;  %v139_v63 = vpop.permute.xlu2 %138 }
  0x79   :  { %v93_v40 = vmul.f32 %v83_v36, %v80_v37  ;;  %v94_v41 = vmul.f32 %v84_v38, %v80_v37 }
  0x7b   :  { %v121_v43 = vadd.f32 %v113_v35, %v93_v40  ;;  %v122_v45 = vadd.f32 %v113_v35, %v94_v41 }
  0x7d   :  { %570 = vtanh.f32 %v121_v43 }
  0x7e   :  { %572 = vtanh.f32 %v122_v45 }
  0x7f   :  { %v70_v42 = vpop.permute.xlu1 %69 }
  0x80   :  { %v75_v44 = vpop.permute.xlu0 %74  ;;  %v89_v48 = vmul.f32 %v83_v36, %v70_v42  ;;  %v90_v51 = vmul.f32 %v84_v38, %v70_v42  ;;  %v167_v17 = vpop.permute.xlu2 %166 }
  0x81   :  { %v91_v47 = vmul.f32 %v83_v36, %v75_v44  ;;  %v92_v50 = vmul.f32 %v84_v38, %v75_v44 }
  0x83   :  { %v571_v54 = vpop.eup %570  ;;  %v119_v57 = vadd.f32 %v108_v33, %v91_v47  ;;  %v120_v58 = vadd.f32 %v108_v33, %v92_v50 }
  0x84   :  { %v573_v56 = vpop.eup %572  ;;  %v157_v59 = vmul.f32 %v571_v54, %v149_v46 }
  0x85   :  { %v158_v60 = vmul.f32 %v573_v56, %v149_v46 }
  0x87   :  { %v98_v49 = vpop.permute.xlu1 %97 }
  0x88   :  { %v103_v52 = vpop.permute.xlu0 %102  ;;  %v115_v4 = vadd.f32 %v98_v49, %v87_v62  ;;  %v116_v7 = vadd.f32 %v98_v49, %v88_v3  ;;  %v208_v40 = vpop.permute.xlu2 %207  ;;  %v295_v62 = vld [vmem:[%s875_s8 + $0x8] sm:$0xff] }
  0x89   :  { %v117_v53 = vadd.f32 %v103_v52, %v89_v48  ;;  %v118_v55 = vadd.f32 %v103_v52, %v90_v51 }
  0x8b   :  { %574 = vtanh.f32 %v117_v53 }
  0x8c   :  { %576 = vtanh.f32 %v118_v55 }
  0x8d   :  { %578 = vtanh.f32 %v119_v57 }
  0x8e   :  { %580 = vtanh.f32 %v120_v58 }
  0x8f   :  { %v177_v61 = vpop.permute.xlu1 %176  ;;  %582 = vtanh.f32 %v115_v4 }
  0x90   :  { %v144_v0 = vpop.permute.xlu0 %143  ;;  %v185_v1 = vadd.f32 %v177_v61, %v157_v59  ;;  %v186_v2 = vadd.f32 %v177_v61, %v158_v60  ;;  %584 = vtanh.f32 %v116_v7  ;;  %v294_v59 = vld [vmem:[%s875_s8] sm:$0xff]  ;;  %v305_v4 = vpop.permute.xlu2 %304 }
  0x91   :  { %v575_v5 = vpop.eup %574 }
  0x92   :  { %240 = vmatpush.msra.mxu0 %v185_v1  ;;  %269 = vmatpush.msra.mxu1 %v186_v2  ;;  %v577_v6 = vpop.eup %576  ;;  %v153_v12 = vmul.f32 %v575_v5, %v139_v63 }
  0x93   :  { %v579_v8 = vpop.eup %578  ;;  %v154_v13 = vmul.f32 %v577_v6, %v139_v63  ;;  %v296_v63 = vld [vmem:[%s875_s8 + $0x10] sm:$0xff] }
  0x94   :  { %v581_v9 = vpop.eup %580  ;;  %v155_v10 = vmul.f32 %v579_v8, %v144_v0  ;;  %v181_v18 = vadd.f32 %v167_v17, %v153_v12 }
  0x95   :  { %v156_v11 = vmul.f32 %v581_v9, %v144_v0  ;;  %v182_v19 = vadd.f32 %v167_v17, %v154_v13  ;;  %v583_v20 = vpop.eup %582  ;;  %v297_v0 = vld [vmem:[%s875_s8 + $0x18] sm:$0xff]  ;;  %s660_s8 = smov [#allocation3]  }
  0x96   :  { %v585_v22 = vpop.eup %584  ;;  %s536_s3 = sshll.u32 %s660_s8, 4  ;;  %s537_s3 = int_to_ptr.vmem [resolvable:$true] %s536_s3 }
  0x97   :  { %v134_v21 = vpop.permute.xlu1 %133 }
  0x98   :  { %v172_v14 = vpop.permute.xlu0 %171  ;;  %v151_v23 = vmul.f32 %v583_v20, %v134_v21  ;;  %v152_v24 = vmul.f32 %v585_v22, %v134_v21 }
  0x99   :  { %v183_v15 = vadd.f32 %v172_v14, %v155_v10  ;;  %v184_v16 = vadd.f32 %v172_v14, %v156_v11 }
  0x9b   :  { %241 = vmatpush.msra.mxu0 %v183_v15  ;;  %270 = vmatpush.msra.mxu1 %v184_v16  ;;  %v320_v16 = vpop.permute.xlu2 %319 }
  0x9d   :  { %242 = vmatpush.msra.mxu0 %v181_v18  ;;  %271 = vmatpush.msra.mxu1 %v182_v19 }
  0x9f   :  { %v213_v39 = vpop.permute.xlu1 %212 }
  0xa0   :  { %v162_v25 = vpop.permute.xlu0 %161 }
  0xa1   :  { %v179_v26 = vadd.f32 %v162_v25, %v151_v23  ;;  %v180_v27 = vadd.f32 %v162_v25, %v152_v24 }
  0xa3   :  { %243 = vmatpush.msra.mxu0 %v179_v26  ;;  %272 = vmatpush.msra.mxu1 %v180_v27 }
  0xa4   :  { %547 = vmatmul.msk.f32.vlgmr.msra.gmra.mxu0 %vm215_vm0, %v187_v28  ;;  %551 = vmatmul.msk.f32.vlgmr.msra.gmra.mxu1 %vm215_vm0, %v187_v28 }
  0xa7   :  { %v198_v49 = vpop.permute.xlu1 %197 }
  0xa8   :  { %v203_v46 = vpop.permute.xlu0 %202 }
  0xac   :  { %548 = vmatmul.msk.f32.gmra.mxu0 %vm215_vm0, %v188_v29  ;;  %552 = vmatmul.msk.f32.gmra.mxu1 %vm215_vm0, %v188_v29 }
  0xaf   :  { %v315_v10 = vpop.permute.xlu1 %314 }
  0xb0   :  { %v310_v6 = vpop.permute.xlu0 %309 }
  0xb4   :  { %549 = vmatmul.msk.f32.gmra.mxu0 %vm215_vm0, %v189_v30  ;;  %553 = vmatmul.msk.f32.gmra.mxu1 %vm215_vm0, %v189_v30  ;;  %v418_v30 = vpop.permute.xlu2 %417 }
  0xb7   :  { %v413_v27 = vpop.permute.xlu1 %412 }
  0xb8   :  { %v408_v18 = vpop.permute.xlu0 %407 }
  0xbc   :  { %550 = vmatmul.msk.f32.gmra.mxu0 %vm215_vm0, %v190_v31  ;;  %554 = vmatmul.msk.f32.gmra.mxu1 %vm215_vm0, %v190_v31 }
 0x121   :  { %v245_v32 = vpop.f32.mrf.mxu0  ;;  %v274_v33 = vpop.f32.mrf.mxu1 }
 0x122   :  { %v246_v51 = vadd.f32 %v245_v32, %v198_v49  ;;  %v275_v52 = vadd.f32 %v274_v33, %v198_v49 }
 0x129   :  { %v248_v35 = vpop.f32.mrf.mxu0  ;;  %v277_v36 = vpop.f32.mrf.mxu1 }
 0x12a   :  { %v249_v48 = vadd.f32 %v248_v35, %v203_v46  ;;  %v278_v50 = vadd.f32 %v277_v36, %v203_v46 }
 0x131   :  { %v251_v37 = vpop.f32.mrf.mxu0  ;;  %v280_v38 = vpop.f32.mrf.mxu1 }
 0x132   :  { %v252_v43 = vadd.f32 %v251_v37, %v208_v40  ;;  %v281_v47 = vadd.f32 %v280_v38, %v208_v40 }
 0x139   :  { %v254_v41 = vpop.f32.mrf.mxu0  ;;  %v283_v42 = vpop.f32.mrf.mxu1 }
 0x13a   :  { %v255_v44 = vadd.f32 %v254_v41, %v213_v39  ;;  %v284_v45 = vadd.f32 %v283_v42, %v213_v39  ;;  %v423_v39 = vpop.permute.xlu0 %422  ;;  %v489_v42 = vmax.f32 %v819_v34, 1e-06 }
 0x13c   :  { %586 = vtanh.f32 %v255_v44  ;;  %v490_v49 = vmin.f32 %v489_v42, 0.999999 }
 0x13d   :  { %588 = vtanh.f32 %v284_v45 }
 0x13e   :  { %590 = vtanh.f32 %v252_v43 }
 0x13f   :  { %592 = vtanh.f32 %v281_v47 }
 0x140   :  { %594 = vtanh.f32 %v249_v48 }
 0x141   :  { %596 = vtanh.f32 %v278_v50 }
 0x142   :  { %v587_v53 = vpop.eup %586  ;;  %598 = vtanh.f32 %v246_v51 }
 0x143   :  { %v589_v54 = vpop.eup %588  ;;  %600 = vtanh.f32 %v275_v52  ;;  %346 = vmatpush.msra.mxu2 %v587_v53  ;;  %v500_v52 = vsub.f32 0.0, %v490_v49 }
 0x144   :  { %v591_v55 = vpop.eup %590  ;;  %375 = vmatpush.msra.mxu3 %v589_v54 }
 0x145   :  { %v593_v56 = vpop.eup %592  ;;  %347 = vmatpush.msra.mxu2 %v591_v55 }
 0x146   :  { %v595_v57 = vpop.eup %594  ;;  %376 = vmatpush.msra.mxu3 %v593_v56 }
 0x147   :  { %v597_v58 = vpop.eup %596  ;;  %348 = vmatpush.msra.mxu2 %v595_v57  ;;  %v501_v57 = vadd.f32 1.0, %v500_v52 }
 0x148   :  { %v599_v60 = vpop.eup %598  ;;  %377 = vmatpush.msra.mxu3 %v597_v58 }
 0x149   :  { %v601_v61 = vpop.eup %600  ;;  %349 = vmatpush.msra.mxu2 %v599_v60 }
 0x14a   :  { %378 = vmatpush.msra.mxu3 %v601_v61  ;;  %555 = vmatmul.msk.f32.vlgmr.msra.gmra.mxu2 %vm215_vm0, %v294_v59 }
 0x14b   :  { %559 = vmatmul.msk.f32.vlgmr.msra.gmra.mxu3 %vm215_vm0, %v294_v59  ;;  %v454_v59 = vpop.permute.xlu1 %453 }
 0x152   :  { %556 = vmatmul.msk.f32.gmra.mxu2 %vm215_vm0, %v295_v62 }
 0x153   :  { %560 = vmatmul.msk.f32.gmra.mxu3 %vm215_vm0, %v295_v62  ;;  %v456_v62 = vperm.slane %v454_v59, 0 }
 0x15a   :  { %557 = vmatmul.msk.f32.gmra.mxu2 %vm215_vm0, %v296_v63 }
 0x15b   :  { %561 = vmatmul.msk.f32.gmra.mxu3 %vm215_vm0, %v296_v63 }
 0x162   :  { %558 = vmatmul.msk.f32.gmra.mxu2 %vm215_vm0, %v297_v0 }
 0x163   :  { %562 = vmatmul.msk.f32.gmra.mxu3 %vm215_vm0, %v297_v0  ;;  %v504_v0 = vmul.f32 -0.5, %v500_v52 }
 0x1cd   :  { %v351_v1 = vpop.f32.mrf.mxu2 }
 0x1ce   :  { %v380_v2 = vpop.f32.mrf.mxu3  ;;  %v352_v7 = vadd.f32 %v351_v1, %v305_v4 }
 0x1cf   :  { %v381_v8 = vadd.f32 %v380_v2, %v305_v4 }
 0x1d0   :  { %602 = vtanh.f32 %v352_v7 }
 0x1d1   :  { %604 = vtanh.f32 %v381_v8  ;;  %v507_v8 = vand.u32 2147483647, %v500_v52 }
 0x1d3   :  { %vm508_vm1 = vcmp.lt.f32.partialorder %v507_v8, 0.0004427343 }
 0x1d5   :  { %v354_v3 = vpop.f32.mrf.mxu2 }
 0x1d6   :  { %v383_v5 = vpop.f32.mrf.mxu3  ;;  %v355_v9 = vadd.f32 %v354_v3, %v310_v6  ;;  %v603_v17 = vpop.eup %602 }
 0x1d7   :  { %v384_v11 = vadd.f32 %v383_v5, %v310_v6  ;;  %v605_v19 = vpop.eup %604  ;;  %v425_v32 = vmul.f32 %v603_v17, %v408_v18  ;;  %v505_v5 = vadd.f32 1.0, %v504_v0  ;;  %v496_v17 = vpop.permute.xlu2 %495 }
 0x1d8   :  { %606 = vtanh.f32 %v355_v9  ;;  %v426_v35 = vmul.f32 %v605_v19, %v408_v18 }
 0x1d9   :  { %608 = vtanh.f32 %v384_v11 }
 0x1dd   :  { %v357_v12 = vpop.f32.mrf.mxu2 }
 0x1de   :  { %v358_v13 = vadd.f32 %v357_v12, %v315_v10  ;;  %v386_v14 = vpop.f32.mrf.mxu3  ;;  %v607_v21 = vpop.eup %606 }
 0x1df   :  { %v387_v15 = vadd.f32 %v386_v14, %v315_v10  ;;  %v609_v24 = vpop.eup %608  ;;  %v427_v29 = vmul.f32 %v607_v21, %v413_v27  ;;  %v512_v12 = vpop.permute.xlu0 %511  ;;  %v506_v14 = vmul.f32 %v505_v5, %v500_v52  ;;  %v498_v21 = vperm.slane %v496_v17, 0 }
 0x1e0   :  { %610 = vtanh.f32 %v358_v13  ;;  %v428_v31 = vmul.f32 %v609_v24, %v413_v27  ;;  %v514_v18 = vperm.slane %v512_v12, 0 }
 0x1e1   :  { %612 = vtanh.f32 %v387_v15  ;;  %v433_v37 = vadd.f32 %v427_v29, %v425_v32 }
 0x1e2   :  { %v442_v40 = vadd.f32 %v428_v31, %v426_v35 }
 0x1e5   :  { %v360_v20 = vpop.f32.mrf.mxu2 }
 0x1e6   :  { %v361_v22 = vadd.f32 %v360_v20, %v320_v16  ;;  %v389_v23 = vpop.f32.mrf.mxu3  ;;  %v611_v26 = vpop.eup %610 }
 0x1e7   :  { %v390_v25 = vadd.f32 %v389_v23, %v320_v16  ;;  %v613_v28 = vpop.eup %612  ;;  %v429_v33 = vmul.f32 %v611_v26, %v418_v30 }
 0x1e8   :  { %614 = vtanh.f32 %v361_v22  ;;  %v430_v36 = vmul.f32 %v613_v28, %v418_v30 }
 0x1e9   :  { %616 = vtanh.f32 %v390_v25  ;;  %v434_v43 = vadd.f32 %v433_v37, %v429_v33 }
 0x1ea   :  { %v443_v45 = vadd.f32 %v442_v40, %v430_v36  ;;  %618 = vlog2.f32 %v501_v57 }
 0x1eb   :  { %620 = vlog2.f32 %v490_v49 }
 0x1ee   :  { %v615_v38 = vpop.eup %614 }
 0x1ef   :  { %v617_v41 = vpop.eup %616  ;;  %v431_v44 = vmul.f32 %v615_v38, %v423_v39 }
 0x1f0   :  { %v432_v46 = vmul.f32 %v617_v41, %v423_v39  ;;  %v619_v7 = vpop.eup %618 }
 0x1f1   :  { %v435_v47 = vadd.f32 %v434_v43, %v431_v44  ;;  %v503_v13 = vmul.f32 0.6931472, %v619_v7  ;;  %v621_v16 = vpop.eup %620 }
 0x1f2   :  { %v444_v48 = vadd.f32 %v443_v45, %v432_v46  ;;  %v492_v20 = vmul.f32 0.6931472, %v621_v16 }
 0x1f3   :  { %v436_v50 = vrot.slane %v435_v47, 4  ;;  %v509_v19 = vsel %vm508_vm1, %v506_v14, %v503_v13 }
 0x1f4   :  { %v445_v51 = vrot.slane %v444_v48, 4  ;;  %v515_v23 = vmul.f32 %v514_v18, %v509_v19  ;;  %v499_v26 = vmul.f32 %v498_v21, %v492_v20 }
 0x1f5   :  { %v437_v53 = vadd.f32 %v436_v50, %v435_v47 }
 0x1f6   :  { %v446_v54 = vadd.f32 %v445_v51, %v444_v48  ;;  %v516_v30 = vadd.f32 %v515_v23, %v499_v26  ;;  %v526_v48 = vlaneseq }
 0x1f7   :  { %v438_v55 = vrot.slane %v437_v53, 2 }
 0x1f8   :  { %v447_v56 = vrot.slane %v446_v54, 2  ;;  %v517_v33 = vmul.f32 1.442695, %v516_v30  ;;  %vm528_vm5 = vcmp.lt.s32.totalorder %v526_v48, 256 }
 0x1f9   :  { %v439_v58 = vadd.f32 %v438_v55, %v437_v53 }
 0x1fa   :  { %v448_v60 = vadd.f32 %v447_v56, %v446_v54 }
 0x1fb   :  { %v440_v61 = vrot.slane %v439_v58, 1 }
 0x1fc   :  { %v449_v34 = vrot.slane %v448_v60, 1 }
 0x1fd   :  { %v441_v63 = vadd.f32 %v440_v61, %v439_v58 }
 0x1fe   :  { %v450_v1 = vadd.f32 %v449_v34, %v448_v60 }
 0x1ff   :  { %v457_v2 = vadd.f32 %v456_v62, %v441_v63 }
 0x200   :  { %v458_v3 = vadd.f32 %v456_v62, %v450_v1 }
 0x201   :  { %v461_v4 = vand.u32 2147483647, %v457_v2  ;;  %v459_v46 = vmax.f32 %v457_v2, 0.0 }
 0x202   :  { %v462_v6 = vand.u32 2147483647, %v458_v3  ;;  %v460_v43 = vmax.f32 %v458_v3, 0.0 }
 0x203   :  { %v463_v9 = vsub.f32 0.0, %v461_v4 }
 0x204   :  { %v464_v10 = vsub.f32 0.0, %v462_v6 }
 0x205   :  { %v465_v11 = vmul.f32 1.442695, %v463_v9 }
 0x206   :  { %v467_v15 = vmul.f32 1.442695, %v464_v10 }
 0x207   :  { %622 = vpow2.f32 %v465_v11 }
 0x208   :  { %624 = vpow2.f32 %v467_v15 }
 0x20d   :  { %v623_v22 = vpop.eup %622 }
 0x20e   :  { %v625_v24 = vpop.eup %624  ;;  %v469_v25 = vadd.f32 1.0, %v623_v22  ;;  %v472_v28 = vmul.f32 -0.5, %v623_v22  ;;  %v475_v35 = vand.u32 2147483647, %v623_v22 }
 0x20f   :  { %v478_v27 = vadd.f32 1.0, %v625_v24  ;;  %v481_v29 = vmul.f32 -0.5, %v625_v24  ;;  %v484_v36 = vand.u32 2147483647, %v625_v24 }
 0x210   :  { %626 = vlog2.f32 %v469_v25  ;;  %v473_v31 = vadd.f32 1.0, %v472_v28  ;;  %vm476_vm2 = vcmp.lt.f32.partialorder %v475_v35, 0.0004427343 }
 0x211   :  { %628 = vlog2.f32 %v478_v27  ;;  %v482_v32 = vadd.f32 1.0, %v481_v29  ;;  %vm485_vm3 = vcmp.lt.f32.partialorder %v484_v36, 0.0004427343 }
 0x212   :  { %v474_v40 = vmul.f32 %v623_v22, %v473_v31  ;;  %630 = vpow2.f32 %v517_v33 }
 0x213   :  { %v483_v42 = vmul.f32 %v625_v24, %v482_v32 }
 0x216   :  { %v627_v37 = vpop.eup %626 }
 0x217   :  { %v629_v38 = vpop.eup %628  ;;  %v471_v39 = vmul.f32 0.6931472, %v627_v37 }
 0x218   :  { %v480_v41 = vmul.f32 0.6931472, %v629_v38  ;;  %v631_v51 = vpop.eup %630 }
 0x219   :  { %v477_v44 = vsel %vm476_vm2, %v474_v40, %v471_v39 }
 0x21a   :  { %v486_v45 = vsel %vm485_vm3, %v483_v42, %v480_v41  ;;  %v487_v49 = vadd.f32 %v477_v44, %v459_v46 }
 0x21b   :  { %v488_v47 = vadd.f32 %v486_v45, %v460_v43 }
 0x21d   :  { %v521_v50 = vrot.slane %v488_v47, 7 }
 0x21f   :  { %v523_v52 = vsel %vm522_vm4, %v487_v49, %v521_v50 }
 0x220   :  { %v525_v53 = vmul.f32 %v631_v51, %v523_v52 }
 0x222   :  { %530 = vst.msk [vmem:[#allocation3] sm:$0x3] %vm528_vm5, %v525_v53 }
 0x223   :  { %541 = dma.vmem_to_hbm [thread:$0]  %s537_s3, 32, %s539_s28, [#allocation4]  }
 0x224   :  { %656 = dma.done.wait [#allocation4], 32  }
 0x225   :  { %657 = vsyncadd [#allocation4], 4294967264 }
 0x226   :  { %546 = vsyncpa [#allocation4], 1 }

</bundles_post_ra>
